<compile_context>
chip_gen: v7x
topology: tpu7x:2x2x1
jax: 0.10.0
libtpu: 0.0.40
codegen_flags: <defaults>
</compile_context>

<pallas_src>
import functools

import jax
import jax.numpy as jnp
from jax.experimental import pallas as pl
from jax.experimental.pallas import tpu as pltpu

TAU = 0.5
LANES = 128
FEATS = 8
BOXES_PER_ROW = LANES // FEATS    # 16 boxes per 128-lane row
CHUNK_ROWS = 256                  # rows per in-kernel compute chunk (~128 KiB values)
MAX_ROWS_PER_STEP = 8192          # 131072 boxes / 4 MiB input block per grid step


def _cdiv(a, b):
    return -(-a // b)


def _round_up(a, b):
    return _cdiv(a, b) * b


def _max_layer(a, b):
    # exactly the PyTorch MaxLayer: x1 + relu(x2 - x1)
    return a + jnp.maximum(b - a, 0.0)


def _min_layer(a, b):
    # exactly the PyTorch MinLayer: -MaxLayer(-x1, -x2)
    return -_max_layer(-a, -b)


@functools.lru_cache(maxsize=None)
def _roll_is_numpy_convention() -> bool:
    """Probe pltpu.roll's direction once (np.roll: element i -> i + shift).

    Makes the kernel robust to either rotate convention; runs one trivial
    single-block kernel and caches the result.  Call outside of jit.
    """
    def probe(x_ref, o_ref):
        o_ref[...] = pltpu.roll(x_ref[...], shift=1, axis=1)

    x = jax.lax.broadcasted_iota(jnp.float32, (8, LANES), 1)
    out = pl.pallas_call(
        probe, out_shape=jax.ShapeDtypeStruct((8, LANES), jnp.float32))(x)
    return bool(jax.block_until_ready(out)[0, 0] == LANES - 1)


def _gather_up(v, k, np_roll):
    """Returns w with w[..., l] = v[..., (l + k) % 128] (fetch from +k lanes)."""
    k = k % LANES
    if k == 0:
        return v
    shift = (LANES - k) % LANES if np_roll else k
    return pltpu.roll(v, shift=shift, axis=1)


def _iou_kernel(x_ref, o_ref, *, tau, chunk, np_roll):
    # x_ref: (rows, 128) f32, lane 8t+k holds feature k of box t of that row.
    # o_ref: (rows, 16)  f32, lane t holds z of box t of that row.
    rows = x_ref.shape[0]
    n_chunks = rows // chunk

    # Lane-compaction plan (box value moves lane 8t -> lane t in 4 masked
    # rolls).  Masks depend only on the lane index; hoisted out of the loop.
    lane = jax.lax.broadcasted_iota(jnp.int32, (1, LANES), 1)
    sel_masks, sel_shifts = [], []
    for i in range(4):
        width = 8 << i                       # lanes per already-compacted group
        lo, hi = 1 << i, 2 << i
        rel = lane % (2 * width)
        sel_masks.append((rel >= lo) & (rel < hi))
        sel_shifts.append(width - lo)

    @pl.loop(0, n_chunks)
    def _(c):
        r0 = pl.multiple_of(c * chunk, chunk)
        a = x_ref[pl.ds(r0, chunk), :]            # feature k of box t at lane 8t+k
        a2 = _gather_up(a, 2, np_roll)
        a3 = _gather_up(a, 3, np_roll)
        a4 = _gather_up(a, 4, np_roll)

        # linear1 folded: I = [x0, x1, x0+x2, x1+x3, x4, x5, x4+x6, x5+x7]
        # MaxLayer(I0,I4) at lane +0 / MaxLayer(I1,I5) at lane +1
        mm = a + jnp.maximum(a4 - a, 0.0)
        s = a + a2                                # I2@+0, I3@+1, I6@+4, I7@+5
        s4 = _gather_up(s, 4, np_roll)
        # MinLayer(I2,I6)@+0, MinLayer(I3,I7)@+1  (== -MaxLayer(-a,-b) bitwise)
        m23 = s - jnp.maximum(s - s4, 0.0)
        wh = jnp.maximum(m23 - mm, 0.0)           # relu(linear2): iw@+0, ih@+1
        area = wh * _gather_up(wh, 1, np_roll)    # Area at +0
        p = a2 * a3                               # x2*x3 @ +0, x6*x7 @ +4
        gd = p + _gather_up(p, 4, np_roll)        # g + d at +0
        union = gd - area                         # linear3: [1, 1, -1]
        z = area - tau * union                    # linear4: [1, -tau]

        # Compact: valid z at lanes 8t (t=0..15) -> lanes 0..15, in box order.
        y = z
        for msk, sh in zip(sel_masks, sel_shifts):
            y = jnp.where(msk, _gather_up(y, sh, np_roll), y)

        o_ref[pl.ds(r0, chunk), :] = y[:, :BOXES_PER_ROW]


def iou_pallas(inp, tau=TAU, max_rows_per_step=MAX_ROWS_PER_STEP):
    n, f = inp.shape
    assert f == FEATS, "IoU expects 8 input features"
    x = inp.astype(jnp.float32)

    np_roll = _roll_is_numpy_convention()

    # Pad only to a multiple of 16 boxes (when needed) so the row-major buffer
    # reshapes for free to (M, 128) lane-dense rows of 16 boxes.
    n16 = _round_up(max(n, 1), BOXES_PER_ROW)
    if n16 != n:
        x = jnp.pad(x, ((0, n16 - n), (0, 0)))
    m_rows = n16 // BOXES_PER_ROW
    x2d = x.reshape(m_rows, LANES)                # free metadata reshape

    # Tile/grid selection: big steps (amortize per-step overhead), >=2 steps
    # when possible (v7x megacore), ragged edges via partial blocks.
    if m_rows < 8:
        chunk = rows_per_step = m_rows
        steps = 1
    else:
        chunk = min(CHUNK_ROWS, _round_up(m_rows, 8))
        steps = max(1, _cdiv(m_rows, max_rows_per_step))
        if m_rows >= 2 * chunk:
            steps = max(steps, 2)
        rows_per_step = _round_up(_cdiv(m_rows, steps), chunk)
        steps = _cdiv(m_rows, rows_per_step)

    out = pl.pallas_call(
        functools.partial(_iou_kernel, tau=tau, chunk=chunk, np_roll=np_roll),
        out_shape=jax.ShapeDtypeStruct((m_rows, BOXES_PER_ROW), jnp.float32),
        grid_spec=pltpu.PrefetchScalarGridSpec(
            num_scalar_prefetch=0,
            grid=(steps,),
            in_specs=[pl.BlockSpec((rows_per_step, LANES), lambda i: (i, 0))],
            out_specs=pl.BlockSpec((rows_per_step, BOXES_PER_ROW),
                                   lambda i: (i, 0)),
        ),
        compiler_params=pltpu.CompilerParams(
            dimension_semantics=("parallel",),
            vmem_limit_bytes=32 * 1024 * 1024,
        ),
        cost_estimate=pl.CostEstimate(
            flops=32 * FEATS * n16, transcendentals=0,
            bytes_accessed=(FEATS * 4 + 4) * n16),
    )(x2d)

    # (M, 16) -> (n16,) is a free row-major reshape (box order); slice the pad.
    return out.reshape(n16)[:n].reshape(n, 1)


def iou_reference(inp, tau=TAU):
    """Pure-JAX reference mirroring the PyTorch forward exactly (real matmuls)."""
    inp = inp.astype(jnp.float32)
    w1 = jnp.array(
        [[1, 0, 0, 0, 0, 0, 0, 0],
         [0, 1, 0, 0, 0, 0, 0, 0],
         [1, 0, 1, 0, 0, 0, 0, 0],
         [0, 1, 0, 1, 0, 0, 0, 0],
         [0, 0, 0, 0, 1, 0, 0, 0],
         [0, 0, 0, 0, 0, 1, 0, 0],
         [0, 0, 0, 0, 1, 0, 1, 0],
         [0, 0, 0, 0, 0, 1, 0, 1]], dtype=jnp.float32)
    w2 = jnp.array([[-1, 0, 1, 0], [0, -1, 0, 1]], dtype=jnp.float32)
    w3 = jnp.array([[1, 1, -1]], dtype=jnp.float32)
    w4 = jnp.array([[1, -tau]], dtype=jnp.float32)

    inter = inp @ w1.T
    m0 = _max_layer(inter[:, 0], inter[:, 4])
    m1 = _max_layer(inter[:, 1], inter[:, 5])
    m2 = _min_layer(inter[:, 2], inter[:, 6])
    m3 = _min_layer(inter[:, 3], inter[:, 7])
    imm = jnp.stack([m0, m1, m2, m3], axis=1)
    inter2 = jnp.maximum(imm @ w2.T, 0.0)
    area = inter2[:, 0] * inter2[:, 1]
    g = (inp[:, 2] * inp[:, 3])[:, None]
    d = (inp[:, 6] * inp[:, 7])[:, None]
    union = jnp.concatenate([g, d, area[:, None]], axis=1) @ w3.T
    z = jnp.concatenate([area[:, None], union], axis=1) @ w4.T
    return z


if __name__ == "__main__":
    key = jax.random.PRNGKey(0)
    N = 16
    x = jax.random.uniform(key, (N, 8), dtype=jnp.float32, minval=0.0, maxval=4.0)

    out = jax.block_until_ready(iou_pallas(x))
    ref = iou_reference(x)
    assert out.shape == (N, 1), out.shape
    assert jnp.allclose(out, ref, atol=1e-5, rtol=1e-5), (out, ref)

    # Extra small shape checks: ragged pad path and multi-chunk partial block.
    for n_extra in (33, 4104):
        xe = jax.random.uniform(jax.random.PRNGKey(1), (n_extra, 8),
                                dtype=jnp.float32, minval=0.0, maxval=4.0)
        oe = jax.block_until_ready(iou_pallas(xe))
        re_ = iou_reference(xe)
        assert oe.shape == (n_extra, 1)
        assert jnp.allclose(oe, re_, atol=1e-5, rtol=1e-5)

    print("KERNEL_OK")
</pallas_src>

<mosaic_0001>
module attributes {stable_mosaic.version = 11 : i64} {
  func.func @probe(%arg0: memref<8x128xf32, #tpu.memory_space<vmem>>, %arg1: memref<8x128xf32, #tpu.memory_space<vmem>>) attributes {dimension_semantics = [], scalar_prefetch = 0 : i64, scratch_operands = 0 : i64, tpu.core_type = #tpu.core_type<tc>} {
    %c0 = arith.constant 0 : index
    %c0_0 = arith.constant 0 : index
    %0 = vector.load %arg0[%c0, %c0_0] : memref<8x128xf32, #tpu.memory_space<vmem>>, vector<8x128xf32>
    %c1_i32 = arith.constant 1 : i32
    %1 = tpu.dynamic_rotate %0 by %c1_i32 dim 1 : vector<8x128xf32>, i32 -> vector<8x128xf32>
    %c0_1 = arith.constant 0 : index
    %c0_2 = arith.constant 0 : index
    %2 = vector.load %arg1[%c0_1, %c0_2] : memref<8x128xf32, #tpu.memory_space<vmem>>, vector<8x128xf32>
    tpu.vector_store %arg1[%c0_1, %c0_2], %1 {strides = array<i32>} : memref<8x128xf32, #tpu.memory_space<vmem>>, vector<8x128xf32>,
    return
  }
}

</mosaic_0001>

<bundles_post_ra>
// kernel: tpu_custom_call.1
= control target key start
LH: loop header
LB: loop body
LE: loop exit
PB: predicated region body
PF: predicated region fallthrough
CT: control target
= control target key end

     0   :  { %6 = vsyncpa [#allocation3], 0  ;;  %s128_s0 = inlined_call_operand.hbm [shape: f32[8,128], index: 0, kind: input, shape index: {}]   ;;  %s129_s1 = inlined_call_operand.hbm [shape: f32[8,128], index: 1, kind: output, shape index: {}]  }
   0x1   :  { %7 = vsyncpa [#allocation4], 0  ;;  %s91_s6 = smov [#allocation2]   ;;  %s43_s10 = scalar_lea.hbm %s128_s0, 128 }
   0x2   :  { %s14_s7 = sshll.u32 %s91_s6, 4  ;;  %p44_p0 = scmp.ne.s32.totalorder %s128_s0, %s43_s10  ;;  %s15_s7 = int_to_ptr.vmem [resolvable:$true] %s14_s7 }
   0x3   :  { %p47_p1 = scmp.lt.u32.totalorder %s43_s10, %s128_s0 }
   0x5   :  { %p49_p2 = pnand %p47_p1, %p44_p0 }
   0x7   :  { %52 = shalt.err (!%p49_p2)
}
   0x8   :  { %s53_s15 = scalar_lea.vmem %s15_s7, 128  ;;  %p58_p4 = scmp.lt.s32.totalorder %s15_s7, %s15_s7 }
   0x9   :  { %p54_p3 = scmp.ne.s32.totalorder %s15_s7, %s53_s15  ;;  %p59_p5 = scmp.lt.s32.totalorder %s53_s15, %s53_s15 }
   0xb   :  { %p60_p6 = por %p59_p5, %p58_p4 }
   0xd   :  { %p61_p7 = pnand %p60_p6, %p54_p3 }
   0xf   :  { %64 = shalt.err (!%p61_p7)
}
  0x10   :  { %17 = dma.hbm_to_vmem [thread:$0]  %s128_s0, 128, %s15_s7, [#allocation3]  }
  0x11   :  { %87 = dma.done.wait [#allocation3], 128  }
  0x12   :  { %88 = vsyncadd [#allocation3], 4294967168  ;;  %v21_v0 = vld [vmem:[#allocation2] sm:$0xff]  ;;  %s92_s18 = smov 1   ;;  %s93_s19 = smov [#allocation5]  }
  0x13   :  { %22 = vrot.lane.b32.xlu0 %v21_v0, %s92_s18  ;;  %s31_s20 = sshll.u32 %s93_s19, 4  ;;  %s32_s20 = int_to_ptr.vmem [resolvable:$true] %s31_s20 }
  0x14   :  { %s65_s21 = scalar_lea.vmem %s32_s20, 128  ;;  %p70_p9 = scmp.lt.s32.totalorder %s32_s20, %s32_s20 }
  0x15   :  { %p66_p8 = scmp.ne.s32.totalorder %s32_s20, %s65_s21  ;;  %p71_p10 = scmp.lt.s32.totalorder %s65_s21, %s65_s21 }
  0x17   :  { %p72_p11 = por %p71_p10, %p70_p9 }
  0x19   :  { %p73_p12 = pnand %p72_p11, %p66_p8 }
  0x85   :  { %v23_v1 = vpop.permute.xlu0 %22 }
  0x86   :  { %24 = vst [vmem:[#allocation5] sm:$0xff] %v23_v1 }
  0x87   :  { %76 = shalt.err (!%p73_p12)
}
  0x88   :  { %s77_s0 = scalar_lea.hbm %s129_s1, 128 }
  0x89   :  { %p78_p13 = scmp.ne.s32.totalorder %s129_s1, %s77_s0  ;;  %p81_p0 = scmp.lt.u32.totalorder %s77_s0, %s129_s1 }
  0x8b   :  { %p83_p1 = pnand %p81_p0, %p78_p13 }
  0x8d   :  { %86 = shalt.err (!%p83_p1)
}
  0x8e   :  { %34 = dma.vmem_to_hbm [thread:$0]  %s32_s20, 128, %s129_s1, [#allocation4]  }
  0x8f   :  { %89 = dma.done.wait [#allocation4], 128  }
  0x90   :  { %90 = vsyncadd [#allocation4], 4294967168 }
  0x91   :  { %38 = vsyncpa [#allocation3], 1 }
  0x92   :  { %39 = vsyncpa [#allocation4], 1 }

</bundles_post_ra>
